<compile_context>
chip_gen: v6e
topology: v6e:2x2x1
jax: 0.10.0
libtpu: 0.0.40
codegen_flags: <defaults>
</compile_context>

<pallas_src>
import functools

import jax
import jax.numpy as jnp
from jax.experimental import pallas as pl
from jax.experimental.pallas import tpu as pltpu

LANE = 128
BF16_PACK = 16  # bf16 sublane packing granularity


def _round_up(x, m):
    return ((x + m - 1) // m) * m


def _recurrence_consts(degree, alpha, beta):
    """Fold the Jacobi three-term recurrence constants (divides at trace time)."""
    consts = []
    for n in range(2, degree + 1):
        a_n = 2.0 * n * (n + alpha + beta) * (2.0 * n + alpha + beta - 2.0)
        c1 = (2.0 * n + alpha + beta - 1.0) * (2.0 * n + alpha + beta) * \
             (2.0 * n + alpha + beta - 2.0) / a_n
        c2 = (2.0 * n + alpha + beta - 1.0) * (alpha * alpha - beta * beta) / a_n
        c3 = (n + alpha + beta - 1.0) * (n + alpha - 1.0) * (n + beta - 1.0) * \
             (2.0 * n + alpha + beta) / a_n
        consts.append((c1, c2, c3))
    return consts


def _make_fused_kernel(num_layers, degree, alpha, beta, in_dims, row_strides):
    consts = _recurrence_consts(degree, alpha, beta)
    # Only needed when a layer's input dim is not a multiple of the bf16 pack:
    # then the padded scratch rows must be zero (their weight rows are zero).
    needs_zero = any(s != i for s, i in zip(row_strides, in_dims))

    def kernel(x_ref, *rest):
        c_refs = rest[:num_layers]          # layer l: (O_l, (D+1)*S_l) bf16
        o_ref = rest[num_layers]            # (out_dim, TB) f32
        basis_ref = rest[num_layers + 1]    # VMEM scratch (max_rows, TB) bf16

        if needs_zero:
            basis_ref[...] = jnp.zeros_like(basis_ref)

        h = x_ref[...].astype(jnp.float32)  # (I_0, TB), feature-major

        for li, c_ref in enumerate(c_refs):
            i_dim = in_dims[li]
            stride = row_strides[li]
            xt = jnp.tanh(h)                                      # (I, TB)
            # P_0
            p_nm2 = jnp.ones_like(xt)
            basis_ref[0:i_dim, :] = p_nm2.astype(jnp.bfloat16)
            p_nm1 = p_nm2
            if degree > 0:                                        # P_1
                p_nm1 = 0.5 * (alpha - beta) + 0.5 * (alpha + beta + 2.0) * xt
                basis_ref[stride:stride + i_dim, :] = p_nm1.astype(jnp.bfloat16)
            for d, (c1, c2, c3) in enumerate(consts, start=2):    # P_2..P_degree
                p_n = (c1 * xt - c2) * p_nm1 - c3 * p_nm2
                basis_ref[d * stride:d * stride + i_dim, :] = p_n.astype(jnp.bfloat16)
                p_nm2, p_nm1 = p_nm1, p_n
            k_dim = (degree + 1) * stride
            # One MXU matmul per layer: (O, K) @ (K, TB) -> (O, TB), f32 accum.
            h = jnp.dot(c_ref[...], basis_ref[0:k_dim, :],
                        preferred_element_type=jnp.float32)

        o_ref[...] = h.astype(o_ref.dtype)

    return kernel


def init_jacobikan_params(key, network, degree):
    """Xavier-normal init matching nn.init.xavier_normal_ on (I, O, degree+1)."""
    params = []
    for i in range(len(network) - 1):
        in_dim, out_dim = network[i], network[i + 1]
        key, sub = jax.random.split(key)
        fan_in = out_dim * (degree + 1)   # torch: size(1) * receptive
        fan_out = in_dim * (degree + 1)   # torch: size(0) * receptive
        std = (2.0 / (fan_in + fan_out)) ** 0.5
        c = std * jax.random.normal(sub, (in_dim, out_dim, degree + 1), jnp.float32)
        params.append(c)
    return params


def prepare_kernel_params(raw_params):
    """(I, O, D+1) f32 -> (O, (D+1)*S) bf16 feature-major weights, where
    S = I rounded up to the bf16 sublane pack (16) and row d*S + i = c[i, o, d].
    Padding rows (if any) are zero."""
    kparams = []
    for c in raw_params:
        in_dim, out_dim, dp1 = c.shape
        s = _round_up(in_dim, BF16_PACK)
        w = jnp.transpose(c, (1, 2, 0))                 # (O, D+1, I)
        if s != in_dim:
            w = jnp.pad(w, ((0, 0), (0, 0), (0, s - in_dim)))
        kparams.append(w.reshape(out_dim, dp1 * s).astype(jnp.bfloat16))
    return tuple(kparams)


@functools.partial(jax.jit,
                   static_argnames=("network", "degree", "alpha", "beta", "tile_b"))
def jacobikan_forward(x, kernel_params, *, network, degree,
                      alpha=1.0, beta=1.0, tile_b=512):
    """Full Jacobikan forward. x: (..., network[0]) -> (B, network[-1])."""
    in_dim = network[0]
    out_dim = network[-1]
    num_layers = len(kernel_params)
    in_dims = tuple(network[:-1])
    strides = tuple(w.shape[1] // (degree + 1) for w in kernel_params)

    x2 = jnp.reshape(x, (-1, in_dim))
    batch = x2.shape[0]

    # Feature-major, bf16: batch on the 128-lane axis.
    xt = jnp.transpose(x2).astype(jnp.bfloat16)          # (in_dim, batch)

    # Batch tile: large (amortizes ~0.35us/step overhead) but capped so large
    # batches still give >= ~8 grid steps (v7x splits "parallel" across 2 TCs).
    tile_b = _round_up(max(tile_b, LANE), LANE)
    tb = min(tile_b, max(LANE, _round_up(batch // 8, LANE)))
    tb = min(tb, _round_up(batch, LANE))
    b_pad = _round_up(batch, tb)
    if b_pad != batch:
        xt = jnp.pad(xt, ((0, 0), (0, b_pad - batch)))

    basis_rows = max((degree + 1) * s for s in strides)

    kernel = _make_fused_kernel(num_layers, degree, float(alpha), float(beta),
                                in_dims, strides)

    in_specs = [pl.BlockSpec((in_dim, tb), lambda b: (0, b))]
    for w in kernel_params:
        # Whole weight resident in VMEM; constant index_map -> fetched once.
        in_specs.append(pl.BlockSpec(w.shape, lambda b: (0, 0)))
    out_spec = pl.BlockSpec((out_dim, tb), lambda b: (0, b))

    flops = int(2 * b_pad * sum(w.shape[0] * w.shape[1] for w in kernel_params))
    transcendentals = int(b_pad * sum(in_dims))
    bytes_accessed = int(xt.size * 2 + sum(w.size * 2 for w in kernel_params)
                         + b_pad * out_dim * 4)

    out = pl.pallas_call(
        kernel,
        out_shape=jax.ShapeDtypeStruct((out_dim, b_pad), jnp.float32),
        grid=(b_pad // tb,),
        in_specs=in_specs,
        out_specs=out_spec,
        scratch_shapes=[pltpu.VMEM((basis_rows, tb), jnp.bfloat16)],
        compiler_params=pltpu.CompilerParams(
            dimension_semantics=("parallel",),
            vmem_limit_bytes=32 * 1024 * 1024),   # safe on v5e/v6e/v7x
        cost_estimate=pl.CostEstimate(
            flops=flops,
            transcendentals=transcendentals,
            bytes_accessed=bytes_accessed),
    )(xt, *kernel_params)

    # (out_dim, b_pad) -> (batch, out_dim); no zero-padded output columns.
    return jnp.transpose(out[:, :batch])


def _reference_forward(x, raw_params, degree, alpha=1.0, beta=1.0, quantized=False):
    """Pure-JAX reference mirroring the PyTorch module. quantized=True applies
    the same bf16 rounding (input + MXU operands) as the kernel."""
    h = jnp.reshape(x, (-1, raw_params[0].shape[0])).astype(jnp.float32)
    if quantized:
        h = h.astype(jnp.bfloat16).astype(jnp.float32)
    for c in raw_params:
        xt = jnp.tanh(h)
        polys = [jnp.ones_like(xt)]
        if degree > 0:
            polys.append(0.5 * (alpha - beta) + (alpha + beta + 2.0) * xt / 2.0)
        for n in range(2, degree + 1):
            a_n = 2 * n * (n + alpha + beta) * (2 * n + alpha + beta - 2)
            t1 = (2 * n + alpha + beta - 1) * (2 * n + alpha + beta) * \
                 (2 * n + alpha + beta - 2) * xt * polys[n - 1]
            t2 = (2 * n + alpha + beta - 1) * (alpha ** 2 - beta ** 2) * polys[n - 1]
            t3 = (n + alpha + beta - 1) * (n + alpha - 1) * (n + beta - 1) * \
                 (2 * n + alpha + beta) * polys[n - 2]
            polys.append((t1 - t2 - t3) / a_n)
        jac = jnp.stack(polys, axis=-1)                     # (B, I, D+1)
        if quantized:
            h = jnp.einsum("bid,iod->bo",
                           jac.astype(jnp.bfloat16), c.astype(jnp.bfloat16),
                           preferred_element_type=jnp.float32)
        else:
            h = jnp.einsum("bid,iod->bo", jac, c)
    return h


if __name__ == "__main__":
    network = (16, 32, 8)     # Jacobikan(network=[16, 32, 8], degree=4)
    degree = 4
    batch = 200               # non-multiple of 128 -> exercises pad + slice

    key = jax.random.PRNGKey(0)
    key, kx = jax.random.split(key)
    x = jax.random.normal(kx, (batch, network[0]), jnp.float32)

    raw_params = init_jacobikan_params(key, network, degree)
    kernel_params = prepare_kernel_params(raw_params)

    out = jacobikan_forward(x, kernel_params, network=network, degree=degree)
    out = jax.block_until_ready(out)
    assert out.shape == (batch, network[-1])

    # Tight check vs a reference with the same bf16 quantization points.
    ref_q = _reference_forward(x, raw_params, degree, quantized=True)
    assert jnp.allclose(out, ref_q, atol=2e-2, rtol=2e-2), "mismatch vs quantized reference"

    # Loose sanity check vs the full-f32 PyTorch-equivalent reference
    # (difference is the expected bf16 quantization of the MXU inputs).
    ref_f32 = _reference_forward(x, raw_params, degree, quantized=False)
    assert jnp.allclose(out, ref_f32, atol=0.25, rtol=0.25), "gross mismatch vs f32 reference"

    print("KERNEL_OK")
</pallas_src>

<mosaic_0001>
module attributes {stable_mosaic.version = 11 : i64} {
  func.func @kernel(%arg0: i32, %arg1: memref<16x128xbf16, #tpu.memory_space<vmem>>, %arg2: memref<32x80xbf16, #tpu.memory_space<vmem>>, %arg3: memref<8x160xbf16, #tpu.memory_space<vmem>>, %arg4: memref<8x128xf32, #tpu.memory_space<vmem>>, %arg5: memref<160x128xbf16, #tpu.memory_space<vmem>>) attributes {dimension_semantics = [#tpu.dimension_semantics<parallel>], iteration_bounds = array<i64: 2>, scalar_prefetch = 0 : i64, scratch_operands = 1 : i64, tpu.core_type = #tpu.core_type<tc>, window_params = [{transform_indices = @transform_0, window_bounds = array<i64: 16, 128>}, {pipeline_mode = #tpu.pipeline_mode<synchronous>, transform_indices = @transform_1, window_bounds = array<i64: 32, 80>}, {pipeline_mode = #tpu.pipeline_mode<synchronous>, transform_indices = @transform_2, window_bounds = array<i64: 8, 160>}, {transform_indices = @transform_3, window_bounds = array<i64: 8, 128>}]} {
    %c0 = arith.constant 0 : index
    %c0_0 = arith.constant 0 : index
    %0 = vector.load %arg1[%c0, %c0_0] : memref<16x128xbf16, #tpu.memory_space<vmem>>, vector<16x128xbf16>
    %1 = arith.extf %0 : vector<16x128xbf16> to vector<16x128xf32>
    %2 = math.tanh %1 : vector<16x128xf32>
    %cst = arith.constant 1.000000e+00 : f32
    %3 = vector.broadcast %cst : f32 to vector<16x128xf32>
    %4 = arith.truncf %3 : vector<16x128xf32> to vector<16x128xbf16>
    %c0_1 = arith.constant 0 : index
    %c0_2 = arith.constant 0 : index
    %5 = vector.load %arg5[%c0_1, %c0_2] : memref<160x128xbf16, #tpu.memory_space<vmem>>, vector<16x128xbf16>
    tpu.vector_store %arg5[%c0_1, %c0_2], %4 {strides = array<i32>} : memref<160x128xbf16, #tpu.memory_space<vmem>>, vector<16x128xbf16>,
    %cst_3 = arith.constant 2.000000e+00 : f32
    %6 = vector.broadcast %cst_3 : f32 to vector<16x128xf32>
    %7 = arith.mulf %6, %2 : vector<16x128xf32>
    %cst_4 = arith.constant 0.000000e+00 : f32
    %8 = vector.broadcast %cst_4 : f32 to vector<16x128xf32>
    %9 = arith.addf %8, %7 : vector<16x128xf32>
    %10 = arith.truncf %9 : vector<16x128xf32> to vector<16x128xbf16>
    %c16 = arith.constant 16 : index
    %c0_5 = arith.constant 0 : index
    %11 = vector.load %arg5[%c16, %c0_5] : memref<160x128xbf16, #tpu.memory_space<vmem>>, vector<16x128xbf16>
    tpu.vector_store %arg5[%c16, %c0_5], %10 {strides = array<i32>} : memref<160x128xbf16, #tpu.memory_space<vmem>>, vector<16x128xbf16>,
    %cst_6 = arith.constant 1.875000e+00 : f32
    %12 = vector.broadcast %cst_6 : f32 to vector<16x128xf32>
    %13 = arith.mulf %12, %2 : vector<16x128xf32>
    %cst_7 = arith.constant 0.000000e+00 : f32
    %14 = vector.broadcast %cst_7 : f32 to vector<16x128xf32>
    %15 = arith.subf %13, %14 : vector<16x128xf32>
    %16 = arith.mulf %15, %9 : vector<16x128xf32>
    %cst_8 = arith.constant 1.125000e+00 : f32
    %17 = vector.broadcast %cst_8 : f32 to vector<16x128xf32>
    %18 = arith.mulf %17, %3 : vector<16x128xf32>
    %19 = arith.subf %16, %18 : vector<16x128xf32>
    %20 = arith.truncf %19 : vector<16x128xf32> to vector<16x128xbf16>
    %c32 = arith.constant 32 : index
    %c0_9 = arith.constant 0 : index
    %21 = vector.load %arg5[%c32, %c0_9] : memref<160x128xbf16, #tpu.memory_space<vmem>>, vector<16x128xbf16>
    tpu.vector_store %arg5[%c32, %c0_9], %20 {strides = array<i32>} : memref<160x128xbf16, #tpu.memory_space<vmem>>, vector<16x128xbf16>,
    %cst_10 = arith.constant 1.86666667 : f32
    %22 = vector.broadcast %cst_10 : f32 to vector<16x128xf32>
    %23 = arith.mulf %22, %2 : vector<16x128xf32>
    %cst_11 = arith.constant 0.000000e+00 : f32
    %24 = vector.broadcast %cst_11 : f32 to vector<16x128xf32>
    %25 = arith.subf %23, %24 : vector<16x128xf32>
    %26 = arith.mulf %25, %19 : vector<16x128xf32>
    %cst_12 = arith.constant 1.600000e+00 : f32
    %27 = vector.broadcast %cst_12 : f32 to vector<16x128xf32>
    %28 = arith.mulf %27, %9 : vector<16x128xf32>
    %29 = arith.subf %26, %28 : vector<16x128xf32>
    %30 = arith.truncf %29 : vector<16x128xf32> to vector<16x128xbf16>
    %c48 = arith.constant 48 : index
    %c0_13 = arith.constant 0 : index
    %31 = vector.load %arg5[%c48, %c0_13] : memref<160x128xbf16, #tpu.memory_space<vmem>>, vector<16x128xbf16>
    tpu.vector_store %arg5[%c48, %c0_13], %30 {strides = array<i32>} : memref<160x128xbf16, #tpu.memory_space<vmem>>, vector<16x128xbf16>,
    %cst_14 = arith.constant 1.875000e+00 : f32
    %32 = vector.broadcast %cst_14 : f32 to vector<16x128xf32>
    %33 = arith.mulf %32, %2 : vector<16x128xf32>
    %cst_15 = arith.constant 0.000000e+00 : f32
    %34 = vector.broadcast %cst_15 : f32 to vector<16x128xf32>
    %35 = arith.subf %33, %34 : vector<16x128xf32>
    %36 = arith.mulf %35, %29 : vector<16x128xf32>
    %cst_16 = arith.constant 2.08333325 : f32
    %37 = vector.broadcast %cst_16 : f32 to vector<16x128xf32>
    %38 = arith.mulf %37, %19 : vector<16x128xf32>
    %39 = arith.subf %36, %38 : vector<16x128xf32>
    %40 = arith.truncf %39 : vector<16x128xf32> to vector<16x128xbf16>
    %c64 = arith.constant 64 : index
    %c0_17 = arith.constant 0 : index
    %41 = vector.load %arg5[%c64, %c0_17] : memref<160x128xbf16, #tpu.memory_space<vmem>>, vector<16x128xbf16>
    tpu.vector_store %arg5[%c64, %c0_17], %40 {strides = array<i32>} : memref<160x128xbf16, #tpu.memory_space<vmem>>, vector<16x128xbf16>,
    %c0_18 = arith.constant 0 : index
    %c0_19 = arith.constant 0 : index
    %42 = vector.load %arg2[%c0_18, %c0_19] : memref<32x80xbf16, #tpu.memory_space<vmem>>, vector<32x80xbf16>
    %c0_20 = arith.constant 0 : index
    %c0_21 = arith.constant 0 : index
    %43 = vector.load %arg5[%c0_20, %c0_21] : memref<160x128xbf16, #tpu.memory_space<vmem>>, vector<80x128xbf16>
    %cst_22 = arith.constant dense<0.000000e+00> : vector<32x128xf32>
    %44 = tpu.matmul %42, %43, %cst_22 {dimension_numbers = #tpu.dot_dimension_numbers<[1], [0], [0], [1], [0, 0, 1, 1], [], []>} : vector<32x80xbf16>, vector<80x128xbf16>, vector<32x128xf32> -> vector<32x128xf32>
    %45 = math.tanh %44 : vector<32x128xf32>
    %cst_23 = arith.constant 1.000000e+00 : f32
    %46 = vector.broadcast %cst_23 : f32 to vector<32x128xf32>
    %47 = arith.truncf %46 : vector<32x128xf32> to vector<32x128xbf16>
    %c0_24 = arith.constant 0 : index
    %c0_25 = arith.constant 0 : index
    %48 = vector.load %arg5[%c0_24, %c0_25] : memref<160x128xbf16, #tpu.memory_space<vmem>>, vector<32x128xbf16>
    tpu.vector_store %arg5[%c0_24, %c0_25], %47 {strides = array<i32>} : memref<160x128xbf16, #tpu.memory_space<vmem>>, vector<32x128xbf16>,
    %cst_26 = arith.constant 2.000000e+00 : f32
    %49 = vector.broadcast %cst_26 : f32 to vector<32x128xf32>
    %50 = arith.mulf %49, %45 : vector<32x128xf32>
    %cst_27 = arith.constant 0.000000e+00 : f32
    %51 = vector.broadcast %cst_27 : f32 to vector<32x128xf32>
    %52 = arith.addf %51, %50 : vector<32x128xf32>
    %53 = arith.truncf %52 : vector<32x128xf32> to vector<32x128xbf16>
    %c32_28 = arith.constant 32 : index
    %c0_29 = arith.constant 0 : index
    %54 = vector.load %arg5[%c32_28, %c0_29] : memref<160x128xbf16, #tpu.memory_space<vmem>>, vector<32x128xbf16>
    tpu.vector_store %arg5[%c32_28, %c0_29], %53 {strides = array<i32>} : memref<160x128xbf16, #tpu.memory_space<vmem>>, vector<32x128xbf16>,
    %cst_30 = arith.constant 1.875000e+00 : f32
    %55 = vector.broadcast %cst_30 : f32 to vector<32x128xf32>
    %56 = arith.mulf %55, %45 : vector<32x128xf32>
    %cst_31 = arith.constant 0.000000e+00 : f32
    %57 = vector.broadcast %cst_31 : f32 to vector<32x128xf32>
    %58 = arith.subf %56, %57 : vector<32x128xf32>
    %59 = arith.mulf %58, %52 : vector<32x128xf32>
    %cst_32 = arith.constant 1.125000e+00 : f32
    %60 = vector.broadcast %cst_32 : f32 to vector<32x128xf32>
    %61 = arith.mulf %60, %46 : vector<32x128xf32>
    %62 = arith.subf %59, %61 : vector<32x128xf32>
    %63 = arith.truncf %62 : vector<32x128xf32> to vector<32x128xbf16>
    %c64_33 = arith.constant 64 : index
    %c0_34 = arith.constant 0 : index
    %64 = vector.load %arg5[%c64_33, %c0_34] : memref<160x128xbf16, #tpu.memory_space<vmem>>, vector<32x128xbf16>
    tpu.vector_store %arg5[%c64_33, %c0_34], %63 {strides = array<i32>} : memref<160x128xbf16, #tpu.memory_space<vmem>>, vector<32x128xbf16>,
    %cst_35 = arith.constant 1.86666667 : f32
    %65 = vector.broadcast %cst_35 : f32 to vector<32x128xf32>
    %66 = arith.mulf %65, %45 : vector<32x128xf32>
    %cst_36 = arith.constant 0.000000e+00 : f32
    %67 = vector.broadcast %cst_36 : f32 to vector<32x128xf32>
    %68 = arith.subf %66, %67 : vector<32x128xf32>
    %69 = arith.mulf %68, %62 : vector<32x128xf32>
    %cst_37 = arith.constant 1.600000e+00 : f32
    %70 = vector.broadcast %cst_37 : f32 to vector<32x128xf32>
    %71 = arith.mulf %70, %52 : vector<32x128xf32>
    %72 = arith.subf %69, %71 : vector<32x128xf32>
    %73 = arith.truncf %72 : vector<32x128xf32> to vector<32x128xbf16>
    %c96 = arith.constant 96 : index
    %c0_38 = arith.constant 0 : index
    %74 = vector.load %arg5[%c96, %c0_38] : memref<160x128xbf16, #tpu.memory_space<vmem>>, vector<32x128xbf16>
    tpu.vector_store %arg5[%c96, %c0_38], %73 {strides = array<i32>} : memref<160x128xbf16, #tpu.memory_space<vmem>>, vector<32x128xbf16>,
    %cst_39 = arith.constant 1.875000e+00 : f32
    %75 = vector.broadcast %cst_39 : f32 to vector<32x128xf32>
    %76 = arith.mulf %75, %45 : vector<32x128xf32>
    %cst_40 = arith.constant 0.000000e+00 : f32
    %77 = vector.broadcast %cst_40 : f32 to vector<32x128xf32>
    %78 = arith.subf %76, %77 : vector<32x128xf32>
    %79 = arith.mulf %78, %72 : vector<32x128xf32>
    %cst_41 = arith.constant 2.08333325 : f32
    %80 = vector.broadcast %cst_41 : f32 to vector<32x128xf32>
    %81 = arith.mulf %80, %62 : vector<32x128xf32>
    %82 = arith.subf %79, %81 : vector<32x128xf32>
    %83 = arith.truncf %82 : vector<32x128xf32> to vector<32x128xbf16>
    %c128 = arith.constant 128 : index
    %c0_42 = arith.constant 0 : index
    %84 = vector.load %arg5[%c128, %c0_42] : memref<160x128xbf16, #tpu.memory_space<vmem>>, vector<32x128xbf16>
    tpu.vector_store %arg5[%c128, %c0_42], %83 {strides = array<i32>} : memref<160x128xbf16, #tpu.memory_space<vmem>>, vector<32x128xbf16>,
    %c0_43 = arith.constant 0 : index
    %c0_44 = arith.constant 0 : index
    %85 = vector.load %arg3[%c0_43, %c0_44] : memref<8x160xbf16, #tpu.memory_space<vmem>>, vector<8x160xbf16>
    %c0_45 = arith.constant 0 : index
    %c0_46 = arith.constant 0 : index
    %86 = vector.load %arg5[%c0_45, %c0_46] : memref<160x128xbf16, #tpu.memory_space<vmem>>, vector<160x128xbf16>
    %cst_47 = arith.constant dense<0.000000e+00> : vector<8x128xf32>
    %87 = tpu.matmul %85, %86, %cst_47 {dimension_numbers = #tpu.dot_dimension_numbers<[1], [0], [0], [1], [0, 0, 1, 1], [], []>} : vector<8x160xbf16>, vector<160x128xbf16>, vector<8x128xf32> -> vector<8x128xf32>
    %c0_48 = arith.constant 0 : index
    %c0_49 = arith.constant 0 : index
    %88 = vector.load %arg4[%c0_48, %c0_49] : memref<8x128xf32, #tpu.memory_space<vmem>>, vector<8x128xf32>
    tpu.vector_store %arg4[%c0_48, %c0_49], %87 {strides = array<i32>} : memref<8x128xf32, #tpu.memory_space<vmem>>, vector<8x128xf32>,
    return
  }
  func.func @transform_0(%arg0: i32) -> (i32, i32) {
    %c0_i32 = arith.constant 0 : i32
    %c0_i32_0 = arith.constant 0 : i32
    return %c0_i32, %arg0 : i32, i32
  }
  func.func @transform_1(%arg0: i32) -> (i32, i32) {
    %c0_i32 = arith.constant 0 : i32
    %c0_i32_0 = arith.constant 0 : i32
    %c0_i32_1 = arith.constant 0 : i32
    return %c0_i32, %c0_i32_0 : i32, i32
  }
  func.func @transform_2(%arg0: i32) -> (i32, i32) {
    %c0_i32 = arith.constant 0 : i32
    %c0_i32_0 = arith.constant 0 : i32
    %c0_i32_1 = arith.constant 0 : i32
    return %c0_i32, %c0_i32_0 : i32, i32
  }
  func.func @transform_3(%arg0: i32) -> (i32, i32) {
    %c0_i32 = arith.constant 0 : i32
    %c0_i32_0 = arith.constant 0 : i32
    return %c0_i32, %arg0 : i32, i32
  }
}

</mosaic_0001>

<bundles_post_ra>
// kernel: jacobikan_forward.1
= control target key start
LH: loop header
LB: loop body
LE: loop exit
PB: predicated region body
PF: predicated region fallthrough
CT: control target
= control target key end

     0   :  { %s1014_s12 = smov 0   ;;  %s1016_s13 = smov 0   ;;  %s1095_s0 = inlined_call_operand.vmem [shape: bf16[16,256], index: 0, kind: input, shape index: {}]   ;;  %s1096_s1 = inlined_call_operand.vmem [shape: bf16[32,80], index: 1, kind: input, shape index: {}]   ;;  %s1097_s2 = inlined_call_operand.vmem [shape: bf16[8,160], index: 2, kind: input, shape index: {}]   ;;  %s1098_s3 = inlined_call_operand.vmem [shape: f32[8,256], index: 3, kind: output, shape index: {}]  }
   0x1   :  { %s1018_s14 = smov 0  }
   0x2 LB: > { %s727_s15 = sadd.s32 4294967295, %s990_s14   ;;  %s1031_s16 = sadd.s32 1, %s990_s14   ;;  %s990_s14 = sphi %s1018_s14, %s1101_s14   ;;  %s986_s13 = sphi %s1016_s13, %s1100_s13   ;;  %s982_s12 = sphi %s1014_s12, %s1099_s12  }
   0x3   : > { %s17_s17 = ssub.s32 %s990_s14, %s1031_s16  ;;  %s20_s18 = sadd.s32 1, %s986_s13 }
   0x4   : > { %p18_p0 = scmp.eq.s32.totalorder %s17_s17, 0  ;;  %p27_p1 = scmp.ne.s32.totalorder %s986_s13, %s982_s12 }
   0x5   : > { %p28_p2 = scmp.eq.s32.totalorder %s990_s14, 0  ;;  %p730_p4 = scmp.ge.s32.totalorder %s990_s14, 2 }
   0x6   : > { %s1040_s19 = scalar_select %p18_p0, %s986_s13, %s20_s18  }
   0x7   : > { %p29_p3 = por %p28_p2, %p27_p1  ;;  %127 = sbr.rel (%p730_p4) target bundleno = 17 (0x11), region = 24 }
   0xc   : > { %130 = sbr.rel (!%p29_p3) target bundleno = 17 (0x11), region = 28  ;;  %s132_s20 = sand.u32 (%p29_p3), 1, %s986_s13  }
   0xd   : > { %s732_s21 = sshll.u32 (%p29_p3), %s990_s14, 2  ;;  %s731_s22 = sshll.u32 (%p29_p3), %s132_s20, 3 }
   0xe   : > { %s136_s25 = scalar_lea.vmem (%p29_p3), %s1095_s0, %s732_s21  ;;  %s134_s26 = scalar_lea.vmem (%p29_p3), [#allocation3], %s731_s22 }
   0xf   : > { %v153_v0 = vld [vmem:[%s136_s25] sm:$0xf] (%p29_p3)  ;;  %v155_v1 = vld [vmem:[%s136_s25 + $0x8] sm:$0xf] (%p29_p3) }
  0x10   : > { %154 = vst [vmem:[%s134_s26] sm:$0xf] (%p29_p3), %v153_v0  ;;  %156 = vst [vmem:[%s134_s26 + $0x4] sm:$0xf] (%p29_p3), %v155_v1 }
  0x11 PF: > { %p733_p5 = scmp.ge.s32.totalorder %s990_s14, 1  ;;  %p183_p6 = scmp.lt.s32.totalorder %s990_s14, 3 }
  0x13   : > { %p184_p7 = pnand %p733_p5, %p183_p6 }
  0x14   : > { %s190_s27 = sand.u32 (!%p184_p7), 1, %s982_s12   ;;  %p212_p8 = scmp.lt.s32.totalorder (!%p184_p7), %s727_s15, 1 }
  0x15   : > { %187 = sbr.rel (%p184_p7) target bundleno = 557 (0x22d), region = 69  ;;  %s734_s30 = sshll.u32 (!%p184_p7), %s190_s27, 3 }
  0x16   : > { %s192_s4 = scalar_lea.vmem (!%p184_p7), [#allocation3], %s734_s30 }
  0x1a   : > { %v942_v2 = vld [vmem:[%s1096_s1] sm:$0xff]   ;;  %v992_v3 = vmov 1065369472   ;;  %vm344_vm0 = vcmask 654336   ;;  %v815_v4 = vld [vmem:[%s192_s4] sm:$0xff]   ;;  %v943_v40 = vld [vmem:[%s1096_s1 + $0x8] sm:$0xff]  }
  0x1b   : > { %224 = vst [vmem:[#allocation2] sm:$0xf] %v992_v3  ;;  %225 = vst [vmem:[#allocation2 + $0x4] sm:$0xf] %v992_v3  ;;  %907 = vmatprep.mubr.msk.bf16.mxu0 %vm344_vm0, %v942_v2  ;;  %v816_v5 = vunpack.c.l.bf16 %v815_v4  ;;  %v817_v6 = vunpack.c.h.bf16 %v815_v4  ;;  %v993_v41 = vmov 0   ;;  %v1063_v42 = vld [vmem:[%s1097_s2] sm:$0xff] }
  0x1c   : > { %627 = vmatprep.subr.bf16.mxu1 %v993_v41  ;;  %vm623_vm1 = vcmask 261120   ;;  %v776_v43 = vcombine.high %v1063_v42, %v1063_v42  ;;  %s1103_s15 = smov (!%p212_p8, %s727_s15), 1 }
  0x1d   : > { %956 = vtanh.f32 %v816_v5  ;;  %s735_s9 = sshll.u32 %s1103_s15, 3 }
  0x1e   : > { %958 = vtanh.f32 %v817_v6  ;;  %787 = vmatprep.mubr.msk.bf16.mxu1 %vm623_vm1, %v776_v43  ;;  %s215_s12 = scalar_lea.vmem %s1098_s3, %s735_s9 }
  0x22   : > { %v941_v7 = vld [vmem:[#allocation2] sm:$0xff]  }
  0x23   : > { %404 = vst [vmem:[#allocation2] sm:$0xf] %v992_v3  ;;  %405 = vst [vmem:[#allocation2 + $0x4] sm:$0xf] %v992_v3 }
  0x2a   : > { %v957_v8 = vpop.eup %956 }
  0x2b   : > { %v959_v9 = vpop.eup %958  ;;  %v226_v10 = vmul.f32 2.0, %v957_v8  ;;  %v240_v11 = vmul.f32 1.875, %v957_v8  ;;  %v256_v15 = vmul.f32 1.8666667, %v957_v8 }
  0x2c   : > { %v227_v12 = vmul.f32 2.0, %v959_v9  ;;  %v241_v13 = vmul.f32 1.875, %v959_v9  ;;  %v257_v17 = vmul.f32 1.8666667, %v959_v9 }
  0x2d   : > { %v242_v14 = vmul.f32 %v240_v11, %v226_v10  ;;  %v260_v20 = vmul.f32 1.6, %v226_v10 }
  0x2e   : > { %v243_v16 = vmul.f32 %v241_v13, %v227_v12  ;;  %v821_v18 = vpack.c.bf16 %v227_v12, %v226_v10  ;;  %v261_v22 = vmul.f32 1.6, %v227_v12 }
  0x2f   : > { %v738_v19 = vadd.f32 -1.125, %v242_v14 }
  0x30   : > { %v739_v21 = vadd.f32 -1.125, %v243_v16  ;;  %878 = vst [vmem:[#allocation2 + $0x8] sm:$0xff] %v821_v18  }
  0x31   : > { %v258_v23 = vmul.f32 %v738_v19, %v256_v15  ;;  %v276_v27 = vmul.f32 2.0833333, %v738_v19 }
  0x32   : > { %v259_v24 = vmul.f32 %v739_v21, %v257_v17  ;;  %v826_v25 = vpack.c.bf16 %v739_v21, %v738_v19  ;;  %v277_v29 = vmul.f32 2.0833333, %v739_v21 }
  0x33   : > { %v262_v26 = vsub.f32 %v258_v23, %v260_v20 }
  0x34   : > { %v263_v28 = vsub.f32 %v259_v24, %v261_v22  ;;  %879 = vst [vmem:[#allocation2 + $0x10] sm:$0xff] %v826_v25  }
  0x35   : > { %v274_v30 = vmul.f32 %v262_v26, %v240_v11 }
  0x36   : > { %v275_v31 = vmul.f32 %v263_v28, %v241_v13  ;;  %v831_v32 = vpack.c.bf16 %v263_v28, %v262_v26 }
  0x37   : > { %v278_v33 = vsub.f32 %v274_v30, %v276_v27  ;;  %v940_v34 = vld [vmem:[#allocation2 + $0x8] sm:$0xff]  }
  0x38   : > { %v279_v35 = vsub.f32 %v275_v31, %v277_v29  ;;  %880 = vst [vmem:[#allocation2 + $0x18] sm:$0xff] %v831_v32   ;;  %406 = vst [vmem:[#allocation2 + $0x8] sm:$0xf] %v992_v3 }
  0x39   : > { %407 = vst [vmem:[#allocation2 + $0xc] sm:$0xf] %v992_v3 }
  0x3a   : > { %v836_v36 = vpack.c.bf16 %v279_v35, %v278_v33 }
  0x3b   : > { %v939_v39 = vld [vmem:[#allocation2 + $0x10] sm:$0xff]  }
  0x3c   : > { %881 = vst [vmem:[#allocation2 + $0x20] sm:$0xff] %v836_v36  }
  0x3f   : > { %v938_v37 = vld [vmem:[#allocation2 + $0x18] sm:$0xff]  }
  0x43   : > { %v937_v38 = vld [vmem:[#allocation2 + $0x20] sm:$0xff]  }
  0x44   : > { %897 = vmatprep.subr.bf16.mxu0 %v937_v38 }
  0x45   : > { %898 = vmatpush3.bf16.msra.mxu0 %v937_v38 }
  0x46   : > { %899 = vmatprep.subr.bf16.mxu0 %v938_v37 }
  0x49   : > { %900 = vmatpush3.bf16.msra.mxu0 %v938_v37 }
  0x4a   : > { %901 = vmatprep.subr.bf16.mxu0 %v939_v39 }
  0x4d   : > { %902 = vmatpush3.bf16.msra.mxu0 %v939_v39 }
  0x4e   : > { %903 = vmatprep.subr.bf16.mxu0 %v940_v34 }
  0x51   : > { %904 = vmatpush3.bf16.msra.mxu0 %v940_v34 }
  0x52   : > { %905 = vmatprep.subr.bf16.mxu0 %v941_v7 }
  0x55   : > { %906 = vmatpush3.bf16.msra.mxu0 %v941_v7 }
  0x58   : > { %908 = vmatmul.mubr.msk.bf16.vlgmr.msra.gmra.mxu0 %vm344_vm0, %v943_v40 }
 0x118   : > { %v909_v44 = vpop.f32.mrf.mxu0 }
 0x119   : > { %960 = vtanh.f32 %v909_v44 }
 0x11a   : > { %v385_v45 = vpop.f32.mrf.mxu0 }
 0x11b   : > { %962 = vtanh.f32 %v385_v45 }
 0x11c   : > { %v910_v46 = vpop.f32.mrf.mxu0 }
 0x11d   : > { %964 = vtanh.f32 %v910_v46 }
 0x11e   : > { %v388_v47 = vpop.f32.mrf.mxu0 }
 0x11f   : > { %966 = vtanh.f32 %v388_v47 }
 0x126   : > { %v961_v48 = vpop.eup %960 }
 0x127   : > { %v410_v49 = vmul.f32 2.0, %v961_v48  ;;  %v438_v50 = vmul.f32 1.875, %v961_v48  ;;  %v470_v57 = vmul.f32 1.8666667, %v961_v48  ;;  %v950_v48 = vld [vmem:[#allocation2 + $0x8] sm:$0xff]  }
 0x128   : > { %v963_v51 = vpop.eup %962 }
 0x129   : > { %v442_v52 = vmul.f32 %v438_v50, %v410_v49  ;;  %v408_v53 = vmul.f32 2.0, %v963_v51  ;;  %v436_v54 = vmul.f32 1.875, %v963_v51  ;;  %v478_v61 = vmul.f32 1.6, %v410_v49 }
 0x12a   : > { %v965_v55 = vpop.eup %964  ;;  %v468_v1 = vmul.f32 1.8666667, %v963_v51 }
 0x12b   : > { %v761_v56 = vadd.f32 -1.125, %v442_v52  ;;  %v440_v58 = vmul.f32 %v436_v54, %v408_v53  ;;  %v411_v59 = vmul.f32 2.0, %v965_v55  ;;  %v439_v62 = vmul.f32 1.875, %v965_v55 }
 0x12c   : > { %v967_v60 = vpop.eup %966  ;;  %v476_v8 = vmul.f32 1.6, %v408_v53  ;;  %v471_v10 = vmul.f32 1.8666667, %v965_v55  ;;  %v775_v52 = vcombine.low %v1063_v42, %v1063_v42 }
 0x12d   : > { %v474_v63 = vmul.f32 %v761_v56, %v470_v57  ;;  %v759_v0 = vadd.f32 -1.125, %v440_v58  ;;  %v846_v2 = vpack.c.bf16 %v411_v59, %v410_v49  ;;  %v443_v3 = vmul.f32 %v439_v62, %v411_v59  ;;  %v951_v49 = vld [vmem:[#allocation2] sm:$0xff]  }
 0x12e   : > { %v409_v4 = vmul.f32 2.0, %v967_v60  ;;  %v437_v5 = vmul.f32 1.875, %v967_v60  ;;  %v479_v13 = vmul.f32 1.6, %v411_v59  ;;  %v469_v14 = vmul.f32 1.8666667, %v967_v60 }
 0x12f   : > { %v482_v6 = vsub.f32 %v474_v63, %v478_v61  ;;  %v472_v7 = vmul.f32 %v759_v0, %v468_v1  ;;  %883 = vst [vmem:[#allocation2 + $0x18] sm:$0xff] %v846_v2   ;;  %v762_v9 = vadd.f32 -1.125, %v443_v3  ;;  %v510_v24 = vmul.f32 2.0833333, %v761_v56 }
 0x130   : > { %v841_v11 = vpack.c.bf16 %v409_v4, %v408_v53  ;;  %v441_v12 = vmul.f32 %v437_v5, %v409_v4  ;;  %v477_v23 = vmul.f32 1.6, %v409_v4  ;;  %v508_v31 = vmul.f32 2.0833333, %v759_v0 }
 0x131   : > { %v480_v15 = vsub.f32 %v472_v7, %v476_v8  ;;  %v475_v16 = vmul.f32 %v762_v9, %v471_v10  ;;  %v856_v18 = vpack.c.bf16 %v762_v9, %v761_v56  ;;  %v506_v19 = vmul.f32 %v482_v6, %v438_v50 }
 0x132   : > { %v760_v17 = vadd.f32 -1.125, %v441_v12  ;;  %882 = vst [vmem:[#allocation2 + $0x10] sm:$0xff] %v841_v11   ;;  %v511_v25 = vmul.f32 2.0833333, %v762_v9 }
 0x133   : > { %v483_v20 = vsub.f32 %v475_v16, %v479_v13  ;;  %885 = vst [vmem:[#allocation2 + $0x28] sm:$0xff] %v856_v18   ;;  %v504_v26 = vmul.f32 %v480_v15, %v436_v54  ;;  %v514_v30 = vsub.f32 %v506_v19, %v510_v24 }
 0x134   : > { %v851_v21 = vpack.c.bf16 %v760_v17, %v759_v0  ;;  %v473_v22 = vmul.f32 %v760_v17, %v469_v14  ;;  %v509_v35 = vmul.f32 2.0833333, %v760_v17 }
 0x135   : > { %v507_v27 = vmul.f32 %v483_v20, %v439_v62  ;;  %v866_v29 = vpack.c.bf16 %v483_v20, %v482_v6  ;;  %v512_v36 = vsub.f32 %v504_v26, %v508_v31 }
 0x136   : > { %v481_v28 = vsub.f32 %v473_v22, %v477_v23  ;;  %884 = vst [vmem:[#allocation2 + $0x20] sm:$0xff] %v851_v21   ;;  %v948_v46 = vld [vmem:[#allocation2 + $0x18] sm:$0xff]  }
 0x137   : > { %v515_v32 = vsub.f32 %v507_v27, %v511_v25  ;;  %887 = vst [vmem:[#allocation2 + $0x38] sm:$0xff] %v866_v29  }
 0x138   : > { %v861_v33 = vpack.c.bf16 %v481_v28, %v480_v15  ;;  %v505_v34 = vmul.f32 %v481_v28, %v437_v5 }
 0x139   : > { %v876_v38 = vpack.c.bf16 %v515_v32, %v514_v30  ;;  %v949_v47 = vld [vmem:[#allocation2 + $0x10] sm:$0xff]  }
 0x13a   : > { %v513_v37 = vsub.f32 %v505_v34, %v509_v35  ;;  %886 = vst [vmem:[#allocation2 + $0x30] sm:$0xff] %v861_v33   ;;  %v946_v44 = vld [vmem:[#allocation2 + $0x28] sm:$0xff]  }
 0x13b   : > { %889 = vst [vmem:[#allocation2 + $0x48] sm:$0xff] %v876_v38  }
 0x13c   : > { %v871_v39 = vpack.c.bf16 %v513_v37, %v512_v36 }
 0x13d   : > { %v947_v45 = vld [vmem:[#allocation2 + $0x20] sm:$0xff]  }
 0x13e   : > { %888 = vst [vmem:[#allocation2 + $0x40] sm:$0xff] %v871_v39   ;;  %v944_v40 = vld [vmem:[#allocation2 + $0x38] sm:$0xff]  }
 0x13f   : > { %628 = vmatpush1.bf16.msra.mxu1 %v944_v40 }
 0x140   : > { %629 = vmatprep.subr.bf16.mxu1 %v993_v41 }
 0x141   : > { %v945_v43 = vld [vmem:[#allocation2 + $0x30] sm:$0xff]  }
 0x142   : > { %v952_v50 = vld [vmem:[#allocation2 + $0x48] sm:$0xff]  }
 0x143   : > { %630 = vmatpush1.bf16.msra.mxu1 %v945_v43 }
 0x144   : > { %631 = vmatprep.subr.bf16.mxu1 %v993_v41 }
 0x145   : > { %v953_v51 = vld [vmem:[#allocation2 + $0x40] sm:$0xff]  }
 0x147   : > { %632 = vmatpush1.bf16.msra.mxu1 %v946_v44 }
 0x148   : > { %633 = vmatprep.subr.bf16.mxu1 %v993_v41 }
 0x14b   : > { %634 = vmatpush1.bf16.msra.mxu1 %v947_v45 }
 0x14c   : > { %635 = vmatprep.subr.bf16.mxu1 %v993_v41 }
 0x14f   : > { %636 = vmatpush1.bf16.msra.mxu1 %v948_v46 }
 0x150   : > { %637 = vmatprep.subr.bf16.mxu1 %v993_v41 }
 0x153   : > { %638 = vmatpush1.bf16.msra.mxu1 %v949_v47 }
 0x154   : > { %639 = vmatprep.subr.bf16.mxu1 %v993_v41 }
 0x157   : > { %640 = vmatpush1.bf16.msra.mxu1 %v950_v48 }
 0x158   : > { %641 = vmatprep.subr.bf16.mxu1 %v993_v41 }
 0x15b   : > { %642 = vmatpush1.bf16.msra.mxu1 %v951_v49 }
 0x15c   : > { %655 = vmatprep.subr.bf16.mxu1 %v993_v41 }
 0x15f   : > { %656 = vmatpush2.bf16.msra.mxu1 %v952_v50 }
 0x160   : > { %657 = vmatprep.subr.bf16.mxu1 %v993_v41 }
 0x163   : > { %658 = vmatpush2.bf16.msra.mxu1 %v953_v51 }
 0x166   : > { %660 = vmatmul.mubr.bf16.vlgmr.msra.gmra.mxu1 %v775_v52 }
 0x226   : > { %v661_v53 = vpop.f32.mrf.mxu1 }
 0x227   : > { %667 = vst [vmem:[%s215_s12] sm:$0xff] %v661_v53 }
 0x228   : > { %v663_v54 = vpop.f32.mrf.mxu1 }
 0x22a   : > { %v664_v55 = vpop.f32.mrf.mxu1 }
 0x22c   : > { %v665_v41 = vpop.f32.mrf.mxu1 }
 0x22d PF: > { %p10_p9 = scmp.ge.s32.totalorder %s1031_s16, 4   ;;  %s1099_s12 = smov %s986_s13 }
 0x22e   : > { %s1100_s13 = smov %s1040_s19  ;;  %s1101_s14 = smov %s1031_s16 }
 0x22f   :  { %12 = sbr.rel (!%p10_p9) target bundleno = 2 (0x2), region = 108 }

</bundles_post_ra>
